<compile_context>
chip_gen: v6e
topology: v6e:2x2x1
jax: 0.10.0
libtpu: 0.0.40
codegen_flags: <defaults>
</compile_context>

<pallas_src>
import functools

import jax
import jax.numpy as jnp
from jax.experimental import pallas as pl
from jax.experimental.pallas import tpu as pltpu


def _final_layer_kernel(lhs_ref, rhs_ref, packed_ref, out_ref, *, rho, w, lamda, mu):
    """Fused dense part of final_Layer.forward up to relu(z - mu*grad_z).

    lhs_ref:    (1, K+F)   = [ -(rho/N)*theta , mean(A, axis=0) ]
    rhs_ref:    (K+F, Np)  = [ q_t ; W^T ]            (zero-padded lanes N..Np)
    packed_ref: (3, Np)    = [ bias ; z ; u ]          (zero-padded lanes N..Np)
    out_ref:    (1, Np)    = relu(z - mu * grad_z)
    """
    # combined = mean(A) @ W^T  -  (rho/N) * (theta @ q_t)   -- single M=1 dot
    combined = jnp.dot(lhs_ref[...], rhs_ref[...],
                       preferred_element_type=jnp.float32)          # (1, Np)

    bias = packed_ref[0:1, :]                                       # (1, Np)
    z = packed_ref[1:2, :]                                          # (1, Np)
    u = packed_ref[2:3, :]                                          # (1, Np)

    # grad_z = W2 + rho*(z - b) + u  with W2 = mean(A)@W^T + bias,
    #          b = w + (1/N)*theta@q_t  (the -rho*(1/N)*theta@q_t term is
    #          already inside `combined` via the lhs scaling).
    grad_z = combined + bias + u + rho * z - (rho * w)
    sum_z = jnp.sum(z, axis=-1, keepdims=True)                      # == z @ ones
    grad_z = grad_z + (2.0 * lamda) * (sum_z - 1.0) \
                    + (2.0 * lamda) * jnp.minimum(z, 0.0)

    out_ref[...] = jnp.maximum(z - mu * grad_z, 0.0)                 # relu


@functools.partial(jax.jit, static_argnames=("rho", "w", "lamda", "mu", "topk"))
def final_layer(MFSIT_data, q_t, linear_weight, linear_bias, *,
                rho, w, lamda, mu, topk=50):
    theta = jnp.asarray(MFSIT_data["theta"], jnp.float32)            # (K,)
    z = jnp.asarray(MFSIT_data["z"], jnp.float32)                     # (N,)
    u = jnp.asarray(MFSIT_data["u"], jnp.float32)                     # (N,)
    A = jnp.asarray(MFSIT_data["input"], jnp.float32)                 # (B, F)
    q = jnp.asarray(q_t, jnp.float32)                                 # (K, N)
    w_t = jnp.asarray(linear_weight, jnp.float32).T                   # (F, N)
    bias = jnp.asarray(linear_bias, jnp.float32)                      # (N,)

    N = z.shape[-1]                      # = 471 in the original model
    K = q.shape[0]
    B, F = A.shape
    KF = K + F
    Np = ((N + 127) // 128) * 128        # lane-dense padding: 471 -> 512

    # Linearity of the batch mean:  mean(A @ W^T + bias) = mean(A) @ W^T + bias.
    a_mean = jnp.mean(A, axis=0)                                       # (F,)
    # Merge both M=1 matmuls into one dot.
    lhs = jnp.concatenate([(-rho / N) * theta, a_mean]).reshape(1, KF)  # (1, KF)
    rhs = jnp.pad(jnp.concatenate([q, w_t], axis=0),
                  ((0, 0), (0, Np - N)))                                # (KF, Np)
    # One multi-row VMEM operand instead of three tiny DMAs; zero-padded lanes
    # keep sum(z) and min(z, 0) exact.
    packed = jnp.pad(jnp.stack([bias, z, u], axis=0),
                     ((0, 0), (0, Np - N)))                             # (3, Np)

    kernel = functools.partial(
        _final_layer_kernel,
        rho=float(rho), w=float(w), lamda=float(lamda), mu=float(mu))

    z_relu = pl.pallas_call(
        kernel,
        out_shape=jax.ShapeDtypeStruct((1, Np), jnp.float32),
        # One-shot kernel: whole arrays resident in VMEM, no grid loop.
        in_specs=[
            pl.BlockSpec(memory_space=pltpu.MemorySpace.VMEM),   # lhs    (1, KF)
            pl.BlockSpec(memory_space=pltpu.MemorySpace.VMEM),   # rhs    (KF, Np)
            pl.BlockSpec(memory_space=pltpu.MemorySpace.VMEM),   # bias/z/u (3, Np)
        ],
        out_specs=pl.BlockSpec(memory_space=pltpu.MemorySpace.VMEM),
        cost_estimate=pl.CostEstimate(
            flops=2 * KF * Np + 12 * Np,
            transcendentals=0,
            bytes_accessed=4 * (KF + KF * Np + 3 * Np + Np)),
    )(lhs, rhs, packed)[0, :N]            # drop pad lanes BEFORE top-k / normalize

    # TODO(synk): torch.topk + scatter_ has no in-kernel Mosaic equivalent; the
    # mask is built with jax.lax.top_k + a threshold compare (no XLA scatter).
    # Ties at the k-th value can select >k entries, but ties at 0 (the common
    # case after relu) never change the result since those entries are 0.
    kth = jax.lax.top_k(z_relu, topk)[0][-1]
    z_masked = jnp.where(z_relu >= kth, z_relu, 0.0)
    return z_masked / (jnp.sum(z_masked) + 1e-8)


def _reference(MFSIT_data, q_t, *, linear_weight, linear_bias,
               rho, w, lamda, mu, topk=50):
    """Pure-JAX mirror of the PyTorch forward (for correctness checking)."""
    theta = jnp.asarray(MFSIT_data["theta"], jnp.float32)
    z = jnp.asarray(MFSIT_data["z"], jnp.float32)
    u = jnp.asarray(MFSIT_data["u"], jnp.float32)
    A = jnp.asarray(MFSIT_data["input"], jnp.float32)
    N = z.shape[-1]
    ones = jnp.ones((N,), jnp.float32)

    b = w + (1.0 / N) * (q_t.T @ theta)
    term1 = A @ jnp.asarray(linear_weight, jnp.float32).T + linear_bias
    W2 = jnp.mean(term1, axis=0)
    grad_z = W2 + rho * (z - b) + u
    grad_z = grad_z + 2.0 * lamda * (jnp.dot(z, ones) - 1.0) * ones \
                    + 2.0 * lamda * jnp.minimum(jnp.zeros_like(z), z)
    z_new = jax.nn.relu(z - mu * grad_z)
    _, idx = jax.lax.top_k(z_new, topk)
    mask = jnp.zeros_like(z_new).at[idx].set(1.0)
    z_new = z_new * mask
    return z_new / (jnp.sum(z_new) + 1e-8)


if __name__ == "__main__":
    key = jax.random.PRNGKey(0)
    k0, k1, k2, k3, k4, k5, k6 = jax.random.split(key, 7)

    # N = 471 is hard-coded in the PyTorch forward; other dims kept small.
    N, K, B, F, TOPK = 471, 8, 4, 32, 50
    rho, w, lamda, mu = 0.5, 0.01, 0.5, 5e-4

    q_t = jax.random.normal(k0, (K, N), dtype=jnp.float32)
    theta = jax.random.normal(k1, (K,), dtype=jnp.float32)
    z0 = jax.random.uniform(k2, (N,), dtype=jnp.float32) + 0.1
    z = z0 / jnp.sum(z0)                                   # simplex-like z (sum == 1)
    u = 0.01 * jax.random.normal(k3, (N,), dtype=jnp.float32)
    A = jax.random.normal(k4, (B, F), dtype=jnp.float32)
    linear_weight = 0.01 * jax.random.normal(k5, (N, F), dtype=jnp.float32)
    linear_bias = 0.01 * jax.random.normal(k6, (N,), dtype=jnp.float32)

    MFSIT_data = {"theta": theta, "z": z, "u": u, "input": A}

    out = final_layer(MFSIT_data, q_t, linear_weight, linear_bias,
                      rho=rho, w=w, lamda=lamda, mu=mu, topk=TOPK)
    out = jax.block_until_ready(out)

    ref = _reference(MFSIT_data, q_t,
                     linear_weight=linear_weight, linear_bias=linear_bias,
                     rho=rho, w=w, lamda=lamda, mu=mu, topk=TOPK)

    assert out.shape == (N,)
    assert jnp.allclose(out, ref, rtol=1e-2, atol=1e-4), (
        f"max abs err = {jnp.max(jnp.abs(out - ref))}")

    print("KERNEL_OK")
</pallas_src>

<mosaic_0001>
module attributes {stable_mosaic.version = 11 : i64} {
  func.func @_final_layer_kernel(%arg0: memref<1x40xf32, #tpu.memory_space<vmem>>, %arg1: memref<40x512xf32, #tpu.memory_space<vmem>>, %arg2: memref<3x512xf32, #tpu.memory_space<vmem>>, %arg3: memref<1x512xf32, #tpu.memory_space<vmem>>) attributes {dimension_semantics = [], scalar_prefetch = 0 : i64, scratch_operands = 0 : i64, tpu.core_type = #tpu.core_type<tc>} {
    %c0 = arith.constant 0 : index
    %c0_0 = arith.constant 0 : index
    %0 = vector.load %arg0[%c0, %c0_0] : memref<1x40xf32, #tpu.memory_space<vmem>>, vector<1x40xf32>
    %c0_1 = arith.constant 0 : index
    %c0_2 = arith.constant 0 : index
    %1 = vector.load %arg1[%c0_1, %c0_2] : memref<40x512xf32, #tpu.memory_space<vmem>>, vector<40x512xf32>
    %cst = arith.constant dense<0.000000e+00> : vector<1x512xf32>
    %2 = tpu.matmul %0, %1, %cst {dimension_numbers = #tpu.dot_dimension_numbers<[1], [0], [0], [1], [0, 0, 1, 1], [], []>} : vector<1x40xf32>, vector<40x512xf32>, vector<1x512xf32> -> vector<1x512xf32>
    %c0_3 = arith.constant 0 : index
    %c0_4 = arith.constant 0 : index
    %3 = vector.load %arg2[%c0_3, %c0_4] : memref<3x512xf32, #tpu.memory_space<vmem>>, vector<1x512xf32>
    %c1 = arith.constant 1 : index
    %c0_5 = arith.constant 0 : index
    %4 = vector.load %arg2[%c1, %c0_5] : memref<3x512xf32, #tpu.memory_space<vmem>>, vector<1x512xf32>
    %c2 = arith.constant 2 : index
    %c0_6 = arith.constant 0 : index
    %5 = vector.load %arg2[%c2, %c0_6] : memref<3x512xf32, #tpu.memory_space<vmem>>, vector<1x512xf32>
    %6 = arith.addf %2, %3 : vector<1x512xf32>
    %7 = arith.addf %6, %5 : vector<1x512xf32>
    %cst_7 = arith.constant 5.000000e-01 : f32
    %8 = vector.broadcast %cst_7 : f32 to vector<1x512xf32>
    %9 = arith.mulf %8, %4 : vector<1x512xf32>
    %10 = arith.addf %7, %9 : vector<1x512xf32>
    %cst_8 = arith.constant 5.000000e-03 : f32
    %11 = vector.broadcast %cst_8 : f32 to vector<1x512xf32>
    %12 = arith.subf %10, %11 : vector<1x512xf32>
    %cst_9 = arith.constant dense<0.000000e+00> : vector<1xf32>
    %13 = vector.multi_reduction <add>, %4, %cst_9 [1] : vector<1x512xf32> to vector<1xf32>
    %14 = vector.shape_cast %13 : vector<1xf32> to vector<1x1xf32>
    %cst_10 = arith.constant 1.000000e+00 : f32
    %15 = vector.broadcast %cst_10 : f32 to vector<1x1xf32>
    %16 = arith.subf %14, %15 : vector<1x1xf32>
    %cst_11 = arith.constant 1.000000e+00 : f32
    %17 = vector.broadcast %cst_11 : f32 to vector<1x1xf32>
    %18 = arith.mulf %17, %16 : vector<1x1xf32>
    %19 = vector.broadcast %18 : vector<1x1xf32> to vector<1x512xf32>
    %20 = arith.addf %12, %19 : vector<1x512xf32>
    %cst_12 = arith.constant 0.000000e+00 : f32
    %21 = vector.broadcast %cst_12 : f32 to vector<1x512xf32>
    %22 = arith.minimumf %4, %21 : vector<1x512xf32>
    %cst_13 = arith.constant 1.000000e+00 : f32
    %23 = vector.broadcast %cst_13 : f32 to vector<1x512xf32>
    %24 = arith.mulf %23, %22 : vector<1x512xf32>
    %25 = arith.addf %20, %24 : vector<1x512xf32>
    %cst_14 = arith.constant 5.000000e-04 : f32
    %26 = vector.broadcast %cst_14 : f32 to vector<1x512xf32>
    %27 = arith.mulf %26, %25 : vector<1x512xf32>
    %28 = arith.subf %4, %27 : vector<1x512xf32>
    %cst_15 = arith.constant 0.000000e+00 : f32
    %29 = vector.broadcast %cst_15 : f32 to vector<1x512xf32>
    %30 = arith.maximumf %28, %29 : vector<1x512xf32>
    %c0_16 = arith.constant 0 : index
    %c0_17 = arith.constant 0 : index
    %31 = vector.load %arg3[%c0_16, %c0_17] : memref<1x512xf32, #tpu.memory_space<vmem>>, vector<1x512xf32>
    tpu.vector_store %arg3[%c0_16, %c0_17], %30 {strides = array<i32>} : memref<1x512xf32, #tpu.memory_space<vmem>>, vector<1x512xf32>,
    return
  }
}

</mosaic_0001>

<bundles_post_ra>
// kernel: final_layer.1
= control target key start
LH: loop header
LB: loop body
LE: loop exit
PB: predicated region body
PF: predicated region fallthrough
CT: control target
= control target key end

     0   :  { %v41_v0 = vlaneseq  ;;  %v379_v4 = vmov 0.0   ;;  %vm283_vm0 = vcmask 1040384   ;;  %vm61_vm1 = vcmask 326656   ;;  %s526_s1 = inlined_call_operand.vmem [shape: f32[40,512], index: 1, kind: input, shape index: {}]   ;;  %s527_s2 = inlined_call_operand.vmem [shape: f32[3,512], index: 2, kind: input, shape index: {}]   ;;  %s528_s0 = inlined_call_operand.vmem [shape: f32[1,40], index: 0, kind: input, shape index: {}]   ;;  %s529_s3 = inlined_call_operand.vmem [shape: f32[1,512], index: 3, kind: output, shape index: {}]  }
   0x1   :  { %v32_v1 = vld [vmem:[%s526_s1 + $0x88] sm:$0xff]  ;;  %v34_v2 = vld [vmem:[%s526_s1 + $0x98] sm:$0xff]  ;;  %v31_v3 = vld [vmem:[%s526_s1 + $0x80] sm:$0xff]  ;;  %129 = vmatprep.mubr.f32.mxu0 %v379_v4  ;;  %200 = vmatprep.mubr.f32.mxu1 %v379_v4 }
   0x2   :  { %87 = vmatprep.subr.mxu0 %v32_v1  ;;  %158 = vmatprep.subr.mxu1 %v34_v2  ;;  %v33_v5 = vld [vmem:[%s526_s1 + $0x90] sm:$0xff]  ;;  %v28_v6 = vld [vmem:[%s526_s1 + $0x68] sm:$0xff]  ;;  %v30_v7 = vld [vmem:[%s526_s1 + $0x78] sm:$0xff]  ;;  %v420_v8 = vshrl.u32 %v41_v0, 7  ;;  %vm361_vm2 = vcmp.lt.s32.totalorder %v41_v0, 512 }
   0x3   :  { %88 = vmatpush1.msra.mxu0 %v31_v3  ;;  %159 = vmatpush1.msra.mxu1 %v33_v5  ;;  %v27_v9 = vld [vmem:[%s526_s1 + $0x60] sm:$0xff]  ;;  %v29_v10 = vld [vmem:[%s526_s1 + $0x70] sm:$0xff]  ;;  %v24_v11 = vld [vmem:[%s526_s1 + $0x48] sm:$0xff] }
   0x4   :  { %89 = vmatprep.subr.mxu0 %v28_v6  ;;  %160 = vmatprep.subr.mxu1 %v30_v7  ;;  %v26_v12 = vld [vmem:[%s526_s1 + $0x58] sm:$0xff]  ;;  %v23_v13 = vld [vmem:[%s526_s1 + $0x40] sm:$0xff]  ;;  %v25_v14 = vld [vmem:[%s526_s1 + $0x50] sm:$0xff]  ;;  %v447_v17 = vsub.s32 0, %v420_v8  ;;  %v450_v18 = vsub.s32 1, %v420_v8  ;;  %v453_v19 = vsub.s32 2, %v420_v8 }
   0x5   :  { %90 = vmatpush1.msra.mxu0 %v27_v9  ;;  %161 = vmatpush1.msra.mxu1 %v29_v10  ;;  %v20_v15 = vld [vmem:[%s526_s1 + $0x28] sm:$0xff]  ;;  %v22_v16 = vld [vmem:[%s526_s1 + $0x38] sm:$0xff]  ;;  %v19_v20 = vld [vmem:[%s526_s1 + $0x20] sm:$0xff]  ;;  %v462_v22 = vsub.s32 3, %v420_v8 }
   0x6   :  { %91 = vmatprep.subr.mxu0 %v24_v11  ;;  %162 = vmatprep.subr.mxu1 %v26_v12  ;;  %v21_v21 = vld [vmem:[%s526_s1 + $0x30] sm:$0xff]  ;;  %v16_v23 = vld [vmem:[%s526_s1 + $0x8] sm:$0xff]  ;;  %v18_v24 = vld [vmem:[%s526_s1 + $0x18] sm:$0xff]  ;;  %v380_v12 = vmov 1966171168  }
   0x7   :  { %92 = vmatpush1.msra.mxu0 %v23_v13  ;;  %163 = vmatpush1.msra.mxu1 %v25_v14  ;;  %v15_v25 = vld [vmem:[%s526_s1] sm:$0xff]  ;;  %v17_v26 = vld [vmem:[%s526_s1 + $0x10] sm:$0xff]  ;;  %v335_v13 = vunpack.c.l.s4 %v380_v12 }
   0x8   :  { %93 = vmatprep.subr.mxu0 %v20_v15  ;;  %164 = vmatprep.subr.mxu1 %v22_v16  ;;  %v479_v27 = vld [vmem:[%s527_s2 + $0x1] ss:$4 sm:$0xf]  ;;  %v14_v28 = vld [vmem:[%s528_s0] sm:$0x1] }
   0x9   :  { %94 = vmatpush1.msra.mxu0 %v19_v20  ;;  %165 = vmatpush1.msra.mxu1 %v21_v21  ;;  %v266_v29 = vrot.slane %v479_v27, %v447_v17  ;;  %v270_v30 = vrot.slane %v479_v27, %v450_v18  ;;  %v274_v31 = vrot.slane %v479_v27, %v453_v19  ;;  %v35_v40 = vld [vmem:[%s527_s2] ss:$4 sm:$0xf]  ;;  %v369_v41 = vld [vmem:[%s527_s2 + $0x2] ss:$4 sm:$0xf] }
   0xa   :  { %95 = vmatprep.subr.mxu0 %v16_v23  ;;  %166 = vmatprep.subr.mxu1 %v18_v24  ;;  %v278_v32 = vrot.slane %v479_v27, %v462_v22  ;;  %v232_v42 = vmul.f32 0.5, %v479_v27  ;;  %v44_v43 = vrot.slane %v35_v40, %v447_v17  ;;  %v52_v44 = vrot.slane %v35_v40, %v453_v19 }
   0xb   :  { %96 = vmatpush1.msra.mxu0 %v15_v25  ;;  %167 = vmatpush1.msra.mxu1 %v17_v26  ;;  %v284_v33 = vsel %vm283_vm0, %v266_v29, 0.0  ;;  %v285_v34 = vsel %vm283_vm0, %v270_v30, 0.0  ;;  %v287_v35 = vsel %vm283_vm0, %v274_v31, 0.0  ;;  %v211_v45 = vrot.slane %v369_v41, %v447_v17 }
   0xc   :  { %370 = vmatmul.mubr.msk.f32.vlgmr.msra.gmra.mxu0 %vm61_vm1, %v14_v28  ;;  %371 = vmatmul.mubr.msk.f32.vlgmr.msra.gmra.mxu1 %vm61_vm1, %v14_v28  ;;  %v286_v36 = vadd.f32 %v285_v34, %v284_v33  ;;  %v289_v37 = vsel %vm283_vm0, %v278_v32, 0.0  ;;  %v219_v46 = vrot.slane %v369_v41, %v453_v19  ;;  %v48_v47 = vrot.slane %v35_v40, %v450_v18 }
   0xd   :  { %v56_v48 = vrot.slane %v35_v40, %v462_v22  ;;  %v237_v50 = vrot.slane %v232_v42, %v447_v17  ;;  %v245_v52 = vrot.slane %v232_v42, %v453_v19  ;;  %v215_v55 = vrot.slane %v369_v41, %v450_v18 }
   0xe   :  { %v288_v38 = vadd.f32 %v287_v35, %v286_v36  ;;  %v223_v56 = vrot.slane %v369_v41, %v462_v22  ;;  %v241_v59 = vrot.slane %v232_v42, %v450_v18  ;;  %v249_v61 = vrot.slane %v232_v42, %v462_v22 }
   0xf   :  { %v298_v62 = vmin.f32 %v479_v27, 0.0  ;;  %v336_v29 = vunpack.c.0.s8 %v335_v13 }
  0x10   :  { %v290_v39 = vadd.f32 %v289_v37, %v288_v38 }
  0x11   :  { %v303_v10 = vrot.slane %v298_v62, %v447_v17  ;;  %v311_v11 = vrot.slane %v298_v62, %v453_v19  ;;  %v307_v21 = vrot.slane %v298_v62, %v450_v18  ;;  %v315_v23 = vrot.slane %v298_v62, %v462_v22 }
  0x12   :  { %291 = vadd.xlane.f32.xlu0 %v290_v39  ;;  %v339_v38 = vsub.s32 %v336_v29, %v420_v8 }
  0x9b   :  { %v292_v57 = vpop.xlane.xlu0 %291 }
  0x9c   :  { %v376_v4 = vadd.f32 -1.0, %v292_v57 }
  0xcc   :  { %v131_v49 = vpop.f32.mrf.mxu0  ;;  %v202_v51 = vpop.f32.mrf.mxu1 }
  0xcd   :  { %v132_v53 = vadd.f32 %v131_v49, %v44_v43  ;;  %v203_v54 = vadd.f32 %v202_v51, %v52_v44 }
  0xce   :  { %v133_v58 = vpop.f32.mrf.mxu0  ;;  %v204_v60 = vpop.f32.mrf.mxu1 }
  0xcf   :  { %v228_v63 = vadd.f32 %v211_v45, %v132_v53  ;;  %v230_v1 = vadd.f32 %v219_v46, %v203_v54  ;;  %v134_v2 = vadd.f32 %v133_v58, %v48_v47  ;;  %v205_v3 = vadd.f32 %v204_v60, %v56_v48 }
  0xd1   :  { %v254_v5 = vadd.f32 %v237_v50, %v228_v63  ;;  %v256_v6 = vadd.f32 %v245_v52, %v230_v1  ;;  %v229_v7 = vadd.f32 %v215_v55, %v134_v2  ;;  %v231_v9 = vadd.f32 %v223_v56, %v205_v3 }
  0xd3   :  { %v372_v14 = vadd.f32 -0.005, %v254_v5  ;;  %v374_v15 = vadd.f32 -0.005, %v256_v6  ;;  %v255_v16 = vadd.f32 %v241_v59, %v229_v7  ;;  %v257_v20 = vadd.f32 %v249_v61, %v231_v9 }
  0xd5   :  { %v373_v24 = vadd.f32 -0.005, %v255_v16  ;;  %v375_v25 = vadd.f32 -0.005, %v257_v20  ;;  %v294_v26 = vadd.f32 %v376_v4, %v372_v14  ;;  %v296_v28 = vadd.f32 %v376_v4, %v374_v15 }
  0xd7   :  { %v295_v30 = vadd.f32 %v376_v4, %v373_v24  ;;  %v297_v31 = vadd.f32 %v376_v4, %v375_v25  ;;  %v320_v17 = vadd.f32 %v303_v10, %v294_v26  ;;  %v322_v32 = vadd.f32 %v311_v11, %v296_v28 }
  0xd9   :  { %v321_v19 = vadd.f32 %v307_v21, %v295_v30  ;;  %v323_v33 = vadd.f32 %v315_v23, %v297_v31  ;;  %v324_v34 = vmul.f32 0.0005, %v320_v17  ;;  %v326_v36 = vmul.f32 0.0005, %v322_v32 }
  0xdb   :  { %v325_v35 = vmul.f32 0.0005, %v321_v19  ;;  %v327_v37 = vmul.f32 0.0005, %v323_v33 }
  0xdd   :  { %v332_v18 = vcombine.low %v324_v34, %v325_v35  ;;  %v333_v39 = vcombine.low %v326_v36, %v327_v37 }
  0xdf   :  { %v340_v22 = vrot.slane %v332_v18, %v339_v38  ;;  %v347_v40 = vrot.slane %v333_v39, %v339_v38 }
  0xe1   :  { %v348_v41 = vcombine.low %v340_v22, %v347_v40 }
  0xe3   :  { %v355_v42 = vrot.slane %v348_v41, %v339_v38 }
  0xe5   :  { %v357_v43 = vsub.f32 %v479_v27, %v355_v42 }
  0xe7   :  { %v358_v44 = vmax.f32 %v357_v43, 0.0 }
  0xe9   :  { %363 = vst.msk [vmem:[%s529_s3] sm:$0xf] %vm361_vm2, %v358_v44 }

</bundles_post_ra>
